<compile_context>
chip_gen: v5e
topology: v5e:2x2
jax: 0.10.0
libtpu: 0.0.40
codegen_flags: <defaults>
</compile_context>

<pallas_src>
import jax
import jax.numpy as jnp
from jax.experimental import pallas as pl
from jax.experimental.pallas import tpu as pltpu

_LANE = 128
_SUBLANE = 8


def _round_up(n, m):
    return (n + m - 1) // m * m


def _feature_extractor_kernel(x_ref, w1_ref, b1_ref, w2_ref, b2_ref, o_ref):
    # x_ref : [tb, d_in]        f32 (lane-unpadded; Mosaic handles narrow K)
    # w1_ref: [d_in, feat_p]    compute dtype (f32 or bf16), lane-padded
    # w2_ref: [feat_p, feat_p]  compute dtype, zero-padded rows/cols
    # b1/b2 : [1, feat_p]       f32, zero-padded lanes
    x = x_ref[...].astype(w1_ref.dtype)
    h = jnp.dot(x, w1_ref[...], preferred_element_type=jnp.float32)
    h = jnp.maximum(h + b1_ref[...], 0.0)                      # ReLU(fc1) in f32
    y = jnp.dot(h.astype(w2_ref.dtype), w2_ref[...],
                preferred_element_type=jnp.float32)
    y = jnp.maximum(y + b2_ref[...], 0.0)                      # ReLU(fc2) in f32
    o_ref[...] = y.astype(o_ref.dtype)                         # [tb, feat_p]


def prepare_feature_extractor_params(w1, b1, w2, b2, *,
                                     compute_dtype=jnp.bfloat16):
    """One-time padding/cast of the static Linear params (do NOT call per step).

    w1: [input_dim, feat] (already transposed vs. torch's [out, in])
    b1: [feat] or [1, feat]
    w2: [feat, feat]
    b2: [feat] or [1, feat]
    Returns (w1p, b1p, w2p, b2p) ready for `feature_extractor`.
    Zero padding is numerically inert: padded weight cols/rows and bias lanes
    are zero, so real lanes are exact and padded lanes stay 0 after ReLU.
    """
    d_in, feat = w1.shape
    feat_p = _round_up(feat, _LANE)
    b1 = jnp.asarray(b1, jnp.float32).reshape(1, feat)
    b2 = jnp.asarray(b2, jnp.float32).reshape(1, feat)

    w1p = jnp.zeros((d_in, feat_p), compute_dtype).at[:, :feat].set(
        w1.astype(compute_dtype))
    w2p = jnp.zeros((feat_p, feat_p), compute_dtype).at[:feat, :feat].set(
        w2.astype(compute_dtype))
    b1p = jnp.zeros((1, feat_p), jnp.float32).at[:, :feat].set(b1)
    b2p = jnp.zeros((1, feat_p), jnp.float32).at[:, :feat].set(b2)
    return w1p, b1p, w2p, b2p


def feature_extractor(x, w1p, b1p, w2p, b2p, *, feat=None, max_block_b=1024):
    """x: [B, input_dim] -> [B, feat] f32 (or lane-padded [B, feat_p] if
    feat is None, to keep the output lane-dense between fused kernels)."""
    B, d_in = x.shape
    feat_p = w2p.shape[1]

    # Pad batch only to a sublane multiple; grid uses cdiv (no tile-multiple
    # inflation of the batch).
    b_p = _round_up(B, _SUBLANE)
    tb = min(max_block_b, b_p)
    grid = (pl.cdiv(b_p, tb),)

    xp = x.astype(jnp.float32)
    if b_p != B:
        xp = jnp.pad(xp, ((0, b_p - B), (0, 0)))

    cost = pl.CostEstimate(
        flops=2 * b_p * (d_in * feat_p + feat_p * feat_p),
        transcendentals=0,
        bytes_accessed=int(xp.size * xp.dtype.itemsize
                           + w1p.size * w1p.dtype.itemsize
                           + w2p.size * w2p.dtype.itemsize
                           + (b1p.size + b2p.size) * 4
                           + b_p * feat_p * 4),
    )

    out_p = pl.pallas_call(
        _feature_extractor_kernel,
        out_shape=jax.ShapeDtypeStruct((b_p, feat_p), jnp.float32),
        grid_spec=pltpu.PrefetchScalarGridSpec(
            num_scalar_prefetch=0,
            grid=grid,
            in_specs=[
                # x streamed per batch tile; last block dim == full array dim
                # (d_in=16) so no lane padding in HBM.
                pl.BlockSpec((tb, d_in), lambda i: (i, 0)),
                # Weights / biases VMEM-resident across all batch tiles.
                pl.BlockSpec((d_in, feat_p), lambda i: (0, 0)),
                pl.BlockSpec((1, feat_p), lambda i: (0, 0)),
                pl.BlockSpec((feat_p, feat_p), lambda i: (0, 0)),
                pl.BlockSpec((1, feat_p), lambda i: (0, 0)),
            ],
            # 128-wide lane-dense output stores (no vst.msk partial stores).
            out_specs=pl.BlockSpec((tb, feat_p), lambda i: (i, 0)),
        ),
        compiler_params=pltpu.CompilerParams(
            # For v7x 2-TC sharding use (pltpu.CORE_PARALLEL,) with >=2 tiles.
            dimension_semantics=("parallel",),
        ),
        cost_estimate=cost,
    )(xp, w1p, b1p, w2p, b2p)

    if feat is None:
        return out_p[:B]            # padded lane-dense output [B, feat_p]
    return out_p[:B, :feat]


if __name__ == "__main__":
    input_dim = 16
    feature_dim = 5
    batch = 2

    key = jax.random.PRNGKey(0)
    k_x, k1w, k1b, k2w, k2b = jax.random.split(key, 5)

    bound1 = 1.0 / (input_dim ** 0.5)
    bound2 = 1.0 / (feature_dim ** 0.5)
    x = jax.random.normal(k_x, (batch, input_dim), jnp.float32)
    # Weights stored [in, out] (transpose of torch's nn.Linear layout).
    w1 = jax.random.uniform(k1w, (input_dim, feature_dim), jnp.float32,
                            minval=-bound1, maxval=bound1)
    b1 = jax.random.uniform(k1b, (feature_dim,), jnp.float32,
                            minval=-bound1, maxval=bound1)
    w2 = jax.random.uniform(k2w, (feature_dim, feature_dim), jnp.float32,
                            minval=-bound2, maxval=bound2)
    b2 = jax.random.uniform(k2b, (feature_dim,), jnp.float32,
                            minval=-bound2, maxval=bound2)

    # Pure-JAX reference of the forward pass.
    ref = jnp.maximum(jnp.maximum(x @ w1 + b1[None, :], 0.0) @ w2 + b2[None, :], 0.0)

    # f32 path: bit-level agreement with the reference.
    params_f32 = prepare_feature_extractor_params(
        w1, b1, w2, b2, compute_dtype=jnp.float32)
    out_f32 = feature_extractor(x, *params_f32, feat=feature_dim)
    jax.block_until_ready(out_f32)
    assert out_f32.shape == (batch, feature_dim)
    assert jnp.allclose(out_f32, ref, atol=1e-5), "f32 mismatch vs reference"

    # bf16 path (recommended on v6e/v7x: MXU-native, halves weight bytes).
    params_bf16 = prepare_feature_extractor_params(
        w1, b1, w2, b2, compute_dtype=jnp.bfloat16)
    out_bf16 = feature_extractor(x, *params_bf16, feat=feature_dim)
    jax.block_until_ready(out_bf16)
    assert out_bf16.shape == (batch, feature_dim)
    assert jnp.allclose(out_bf16, ref, atol=3e-2, rtol=3e-2), \
        "bf16 mismatch vs reference"

    print("KERNEL_OK")
</pallas_src>

<mosaic_0001>
module attributes {stable_mosaic.version = 11 : i64} {
  func.func @_feature_extractor_kernel(%arg0: i32, %arg1: memref<8x16xf32, #tpu.memory_space<vmem>>, %arg2: memref<16x128xf32, #tpu.memory_space<vmem>>, %arg3: memref<1x128xf32, #tpu.memory_space<vmem>>, %arg4: memref<128x128xf32, #tpu.memory_space<vmem>>, %arg5: memref<1x128xf32, #tpu.memory_space<vmem>>, %arg6: memref<8x128xf32, #tpu.memory_space<vmem>>) attributes {dimension_semantics = [#tpu.dimension_semantics<parallel>], iteration_bounds = array<i64: 1>, scalar_prefetch = 0 : i64, scratch_operands = 0 : i64, tpu.core_type = #tpu.core_type<tc>, window_params = [{transform_indices = @transform_0, window_bounds = array<i64: 8, 16>}, {pipeline_mode = #tpu.pipeline_mode<synchronous>, transform_indices = @transform_1, window_bounds = array<i64: 16, 128>}, {pipeline_mode = #tpu.pipeline_mode<synchronous>, transform_indices = @transform_2, window_bounds = array<i64: 1, 128>}, {pipeline_mode = #tpu.pipeline_mode<synchronous>, transform_indices = @transform_3, window_bounds = array<i64: 128, 128>}, {pipeline_mode = #tpu.pipeline_mode<synchronous>, transform_indices = @transform_4, window_bounds = array<i64: 1, 128>}, {transform_indices = @transform_5, window_bounds = array<i64: 8, 128>}]} {
    %c0 = arith.constant 0 : index
    %c0_0 = arith.constant 0 : index
    %0 = vector.load %arg1[%c0, %c0_0] : memref<8x16xf32, #tpu.memory_space<vmem>>, vector<8x16xf32>
    %c0_1 = arith.constant 0 : index
    %c0_2 = arith.constant 0 : index
    %1 = vector.load %arg2[%c0_1, %c0_2] : memref<16x128xf32, #tpu.memory_space<vmem>>, vector<16x128xf32>
    %cst = arith.constant dense<0.000000e+00> : vector<8x128xf32>
    %2 = tpu.matmul %0, %1, %cst {dimension_numbers = #tpu.dot_dimension_numbers<[1], [0], [0], [1], [0, 0, 1, 1], [], []>} : vector<8x16xf32>, vector<16x128xf32>, vector<8x128xf32> -> vector<8x128xf32>
    %c0_3 = arith.constant 0 : index
    %c0_4 = arith.constant 0 : index
    %3 = vector.load %arg3[%c0_3, %c0_4] : memref<1x128xf32, #tpu.memory_space<vmem>>, vector<1x128xf32>
    %4 = vector.broadcast %3 : vector<1x128xf32> to vector<8x128xf32>
    %5 = arith.addf %2, %4 : vector<8x128xf32>
    %cst_5 = arith.constant 0.000000e+00 : f32
    %6 = vector.broadcast %cst_5 : f32 to vector<8x128xf32>
    %7 = arith.maximumf %5, %6 : vector<8x128xf32>
    %c0_6 = arith.constant 0 : index
    %c0_7 = arith.constant 0 : index
    %8 = vector.load %arg4[%c0_6, %c0_7] : memref<128x128xf32, #tpu.memory_space<vmem>>, vector<128x128xf32>
    %cst_8 = arith.constant dense<0.000000e+00> : vector<8x128xf32>
    %9 = tpu.matmul %7, %8, %cst_8 {dimension_numbers = #tpu.dot_dimension_numbers<[1], [0], [0], [1], [0, 0, 1, 1], [], []>} : vector<8x128xf32>, vector<128x128xf32>, vector<8x128xf32> -> vector<8x128xf32>
    %c0_9 = arith.constant 0 : index
    %c0_10 = arith.constant 0 : index
    %10 = vector.load %arg5[%c0_9, %c0_10] : memref<1x128xf32, #tpu.memory_space<vmem>>, vector<1x128xf32>
    %11 = vector.broadcast %10 : vector<1x128xf32> to vector<8x128xf32>
    %12 = arith.addf %9, %11 : vector<8x128xf32>
    %cst_11 = arith.constant 0.000000e+00 : f32
    %13 = vector.broadcast %cst_11 : f32 to vector<8x128xf32>
    %14 = arith.maximumf %12, %13 : vector<8x128xf32>
    %c0_12 = arith.constant 0 : index
    %c0_13 = arith.constant 0 : index
    %15 = vector.load %arg6[%c0_12, %c0_13] : memref<8x128xf32, #tpu.memory_space<vmem>>, vector<8x128xf32>
    tpu.vector_store %arg6[%c0_12, %c0_13], %14 {strides = array<i32>} : memref<8x128xf32, #tpu.memory_space<vmem>>, vector<8x128xf32>,
    return
  }
  func.func @transform_0(%arg0: i32) -> (i32, i32) {
    %c0_i32 = arith.constant 0 : i32
    %c0_i32_0 = arith.constant 0 : i32
    return %arg0, %c0_i32 : i32, i32
  }
  func.func @transform_1(%arg0: i32) -> (i32, i32) {
    %c0_i32 = arith.constant 0 : i32
    %c0_i32_0 = arith.constant 0 : i32
    %c0_i32_1 = arith.constant 0 : i32
    return %c0_i32, %c0_i32_0 : i32, i32
  }
  func.func @transform_2(%arg0: i32) -> (i32, i32) {
    %c0_i32 = arith.constant 0 : i32
    %c0_i32_0 = arith.constant 0 : i32
    %c0_i32_1 = arith.constant 0 : i32
    return %c0_i32, %c0_i32_0 : i32, i32
  }
  func.func @transform_3(%arg0: i32) -> (i32, i32) {
    %c0_i32 = arith.constant 0 : i32
    %c0_i32_0 = arith.constant 0 : i32
    %c0_i32_1 = arith.constant 0 : i32
    return %c0_i32, %c0_i32_0 : i32, i32
  }
  func.func @transform_4(%arg0: i32) -> (i32, i32) {
    %c0_i32 = arith.constant 0 : i32
    %c0_i32_0 = arith.constant 0 : i32
    %c0_i32_1 = arith.constant 0 : i32
    return %c0_i32, %c0_i32_0 : i32, i32
  }
  func.func @transform_5(%arg0: i32) -> (i32, i32) {
    %c0_i32 = arith.constant 0 : i32
    %c0_i32_0 = arith.constant 0 : i32
    return %arg0, %c0_i32 : i32, i32
  }
}

</mosaic_0001>

<bundles_post_ra>
// kernel: tpu_custom_call.1
= control target key start
LH: loop header
LB: loop body
LE: loop exit
PB: predicated region body
PF: predicated region fallthrough
CT: control target
= control target key end

     0   :  { %10 = vsyncpa [#allocation3], 0  ;;  %s323_s0 = inlined_call_operand.hbm [shape: f32[8,16], index: 0, kind: input, shape index: {}]   ;;  %s324_s1 = inlined_call_operand.hbm [shape: f32[16,128], index: 1, kind: input, shape index: {}]   ;;  %s325_s2 = inlined_call_operand.vmem [shape: f32[1,128], index: 2, kind: input, shape index: {}]   ;;  %s326_s3 = inlined_call_operand.hbm [shape: f32[128,128], index: 3, kind: input, shape index: {}]   ;;  %s327_s4 = inlined_call_operand.vmem [shape: f32[1,128], index: 4, kind: input, shape index: {}]   ;;  %s328_s5 = inlined_call_operand.hbm [shape: f32[8,128], index: 5, kind: output, shape index: {}]  }
   0x1   :  { %11 = vsyncpa [#allocation6], 0  ;;  %s28_s20 = sshll.u32 %s324_s1, 4  ;;  %s29_s20 = int_to_ptr.hbm [resolvable:$true] %s28_s20 }
   0x2   :  { %12 = vsyncpa [#allocation4], 0  ;;  %s269_s21 = smov [#allocation5]   ;;  %s18_s25 = sshll.u32 %s323_s0, 4  ;;  %s19_s25 = int_to_ptr.hbm [resolvable:$true] %s18_s25 }
   0x3   :  { %s30_s22 = sshll.u32 %s269_s21, 4  ;;  %s270_s26 = smov 128   ;;  %s31_s22 = int_to_ptr.vmem [resolvable:$true] %s30_s22 }
   0x4   :  { %s271_s27 = smov 8   ;;  %s272_s28 = smov [#allocation2]  }
   0x5   :  { %36 = dma.hbm_to_vmem [thread:$0]  %s29_s20, 256, %s31_s22, [#allocation6], %s270_s26, %s270_s26, %s271_s27  }
   0x6   :  { %s20_s29 = sshll.u32 %s272_s28, 4  ;;  %s43_s7 = sshll.u32 %s326_s3, 4  ;;  %s21_s29 = int_to_ptr.vmem [resolvable:$true] %s20_s29  ;;  %s44_s7 = int_to_ptr.hbm [resolvable:$true] %s43_s7 }
   0x7   :  { %23 = dma.hbm_to_vmem [thread:$0]  %s19_s25, 128, %s21_s29, [#allocation3]  }
   0x8   :  { %s273_s1 = smov [#allocation7]  }
   0x9   :  { %s45_s8 = sshll.u32 %s273_s1, 4  ;;  %s46_s8 = int_to_ptr.vmem [resolvable:$true] %s45_s8 }
   0xa   :  { %51 = dma.hbm_to_vmem [thread:$0]  %s44_s7, 2048, %s46_s8, [#allocation6], %s270_s26, %s270_s26, %s271_s27  }
   0xb   :  { %263 = dma.done.wait [#allocation3], 128  }
   0xc   :  { %264 = vsyncadd [#allocation3], 4294967168 }
   0xd   :  { %265 = dma.done.wait [#allocation6], 2304  }
   0xe   :  { %266 = vsyncadd [#allocation6], 4294964992  ;;  %v68_v0 = vld [vmem:[#allocation5 + $0x8] sm:$0xff]  ;;  %v67_v1 = vld [vmem:[#allocation5] sm:$0xff]  ;;  %vm73_vm0 = vcmask 130048   ;;  %s274_s11 = smov [#allocation8]  }
   0xf   :  { %91 = vmatpush.msra.mxu0 %v68_v0  ;;  %v66_v2 = vld [vmem:[#allocation2] sm:$0xff]  ;;  %v113_v3 = vld [vmem:[#allocation7 + $0x78] sm:$0xff]  ;;  %v112_v4 = vld [vmem:[#allocation7 + $0x70] sm:$0xff]  ;;  %s145_s12 = sshll.u32 %s274_s11, 4  ;;  %s147_s15 = sshll.u32 %s328_s5, 4  ;;  %s146_s12 = int_to_ptr.vmem [resolvable:$true] %s145_s12  ;;  %s148_s15 = int_to_ptr.hbm [resolvable:$true] %s147_s15 }
  0x10   :  { %118 = vmatpush.msra.mxu1 %v113_v3  ;;  %v111_v5 = vld [vmem:[#allocation7 + $0x68] sm:$0xff]  ;;  %v110_v6 = vld [vmem:[#allocation7 + $0x60] sm:$0xff]  ;;  %v109_v7 = vld [vmem:[#allocation7 + $0x58] sm:$0xff] }
  0x11   :  { %92 = vmatpush.msra.mxu0 %v67_v1  ;;  %v108_v8 = vld [vmem:[#allocation7 + $0x50] sm:$0xff]  ;;  %v107_v9 = vld [vmem:[#allocation7 + $0x48] sm:$0xff]  ;;  %v106_v10 = vld [vmem:[#allocation7 + $0x40] sm:$0xff] }
  0x12   :  { %158 = vmatmul.msk.f32.vlgmr.msra.gmra.mxu0 %vm73_vm0, %v66_v2  ;;  %119 = vmatpush.msra.mxu1 %v112_v4  ;;  %v105_v11 = vld [vmem:[#allocation7 + $0x38] sm:$0xff]  ;;  %v104_v12 = vld [vmem:[#allocation7 + $0x30] sm:$0xff]  ;;  %v103_v13 = vld [vmem:[#allocation7 + $0x28] sm:$0xff] }
  0x13   :  { %v102_v14 = vld [vmem:[#allocation7 + $0x20] sm:$0xff]  ;;  %v101_v15 = vld [vmem:[#allocation7 + $0x18] sm:$0xff]  ;;  %v100_v16 = vld [vmem:[#allocation7 + $0x10] sm:$0xff] }
  0x14   :  { %120 = vmatpush.msra.mxu1 %v111_v5  ;;  %v99_v17 = vld [vmem:[#allocation7 + $0x8] sm:$0xff]  ;;  %v98_v18 = vld [vmem:[#allocation7] sm:$0xff] }
  0x15   :  { %v165_v19 = vld [vmem:[%s325_s2] ss:$0 sm:$0xff] }
  0x16   :  { %121 = vmatpush.msra.mxu1 %v110_v6  ;;  %v166_v23 = vld [vmem:[%s327_s4] ss:$0 sm:$0xff] }
  0x18   :  { %122 = vmatpush.msra.mxu1 %v109_v7 }
  0x1a   :  { %123 = vmatpush.msra.mxu1 %v108_v8 }
  0x1c   :  { %124 = vmatpush.msra.mxu1 %v107_v9 }
  0x1e   :  { %125 = vmatpush.msra.mxu1 %v106_v10 }
  0x20   :  { %126 = vmatpush.msra.mxu1 %v105_v11 }
  0x22   :  { %127 = vmatpush.msra.mxu1 %v104_v12 }
  0x24   :  { %128 = vmatpush.msra.mxu1 %v103_v13 }
  0x26   :  { %129 = vmatpush.msra.mxu1 %v102_v14 }
  0x28   :  { %130 = vmatpush.msra.mxu1 %v101_v15 }
  0x2a   :  { %131 = vmatpush.msra.mxu1 %v100_v16 }
  0x2c   :  { %132 = vmatpush.msra.mxu1 %v99_v17 }
  0x2e   :  { %133 = vmatpush.msra.mxu1 %v98_v18 }
  0x8f   :  { %v94_v20 = vpop.f32.mrf.mxu0 }
  0x90   :  { %v95_v21 = vadd.f32 %v165_v19, %v94_v20 }
  0x92   :  { %v97_v22 = vmax.f32 %v95_v21, 0.0 }
  0x94   :  { %134 = vmatmul.f32.vlgmr.msra.gmra.mxu1 %v97_v22 }
 0x111   :  { %v135_v24 = vpop.f32.mrf.mxu1 }
 0x112   :  { %v136_v25 = vadd.f32 %v166_v23, %v135_v24 }
 0x114   :  { %v138_v26 = vmax.f32 %v136_v25, 0.0 }
 0x116   :  { %139 = vst [vmem:[#allocation8] sm:$0xff] %v138_v26 }
 0x117   :  { %150 = dma.vmem_to_hbm [thread:$0]  %s146_s12, 128, %s148_s15, [#allocation4]  }
 0x118   :  { %267 = dma.done.wait [#allocation4], 128  }
 0x119   :  { %268 = vsyncadd [#allocation4], 4294967168 }
 0x11a   :  { %155 = vsyncpa [#allocation3], 1 }
 0x11b   :  { %156 = vsyncpa [#allocation6], 1 }
 0x11c   :  { %157 = vsyncpa [#allocation4], 1 }

</bundles_post_ra>
